<compile_context>
chip_gen: v6e
topology: v6e:2x2x1
jax: 0.10.0
libtpu: 0.0.40
codegen_flags: <defaults>
</compile_context>

<pallas_src>
import functools
import math

import jax
import jax.numpy as jnp
import numpy as np
from jax.experimental import pallas as pl
from jax.experimental.pallas import tpu as pltpu


_SUBLANE = {4: 8, 2: 16, 1: 32}            # sublane packing per itemsize
_LANE = 128
_TARGET_BLOCK_BYTES = 4 * 1024 * 1024      # ~4 MiB block: >= ~85% HBM roofline
_LANE_ELEM_CAP = 256 * 1024                # keeps (1, tF) f32 PE temps <= 1 MiB
_VMEM_LIMIT_BYTES = 32 * 1024 * 1024       # 4 blocks + PE temps, all generations


def _pe_add_kernel(x_ref, o_ref, *, d_model: int, encoding_type: str):
    """x_ref / o_ref: (tB, tF) block of the flattened (B, S*D) array."""
    tB, tF = x_ref.shape
    j0 = pl.program_id(1) * tF                        # flat offset of this tile

    # flat index of each lane; exact in f32 for S*D < 2**24 (max_len=5000 with
    # any realistic d_model).  TODO(synk): chunk the flat axis if S*D >= 2**24.
    flat = jax.lax.broadcasted_iota(jnp.int32, (1, tF), 1) + j0
    flat_f = flat.astype(jnp.float32)

    # pos = flat // d_model, col = flat % d_model, via exact float arithmetic:
    # correctly-rounded f32 division is off by at most 1 after floor; one
    # correction step makes pos/col exact (all products stay below 2**24).
    d_f = jnp.float32(d_model)
    pos = jnp.floor(flat_f / d_f)
    col = flat_f - pos * d_f
    pos = jnp.where(col < 0.0, pos - 1.0, pos)
    col = jnp.where(col < 0.0, col + d_f, col)
    pos = jnp.where(col >= d_f, pos + 1.0, pos)
    col = jnp.where(col >= d_f, col - d_f, col)

    two_i = jnp.floor(col * 0.5) * 2.0                # (col // 2) * 2, exact
    is_odd = (col - two_i) > 0.5

    c = math.log(10000.0) / float(d_model)
    if encoding_type == "sinusoidal":
        freq = jnp.exp(two_i * jnp.float32(-c))       # div_term = exp(-c * 2i)
    else:  # 'fourier': pos / exp(-c*2i) == pos * exp(+c*2i)  (no full divide)
        freq = jnp.exp(two_i * jnp.float32(c))

    angle = pos * freq                                # (1, tF) f32
    # True cos for odd columns (matches torch's pe[:,1::2]=cos exactly in
    # structure); both transcendentals are EUP work hidden under the DMA.
    pe = jnp.where(is_odd, jnp.cos(angle), jnp.sin(angle))

    # eval-mode dropout is identity; broadcast PE row across the batch rows.
    o_ref[...] = x_ref[...] + pe.astype(o_ref.dtype)


def _pick_tiles(B, F, itemsize, target_bytes=_TARGET_BLOCK_BYTES):
    """Pick (tB, tF) for the flattened (B, S*D) layout.

    Guarantees: tF is a multiple of 128 (or the full dim), tB is a multiple of
    the dtype's sublane packing (or the full dim), block_bytes <= target_bytes,
    and the grid has >= 2 steps whenever the data is big enough to split.
    """
    sub = _SUBLANE.get(itemsize, 8)

    # lane (flat) tile -- budgeted against the smallest batch tile we may use
    min_tb = B if B <= sub else sub
    lane_budget = max(_LANE, target_bytes // max(1, min_tb * itemsize))
    lane_budget = min(lane_budget, _LANE_ELEM_CAP)
    if F <= _LANE:
        tF = F                                        # full dim: legal, tiny case
    else:
        tF = max(_LANE, (min(F, lane_budget) // _LANE) * _LANE)

    # sublane (batch) tile -- grow to fill the block-size target
    if B <= sub:
        tB = B
    else:
        rows = max(sub, target_bytes // max(1, tF * itemsize))
        tB = min(B, (rows // sub) * sub)
        tB = max(sub, (tB // sub) * sub)

    # ensure the (parallel, parallel) grid has >= 2 steps when possible so the
    # two v7x TensorCores both get work.
    steps = (-(-B // tB)) * (-(-F // tF))
    if steps < 2:
        if B >= 2 * sub:
            tB = max(sub, ((B // 2) // sub) * sub)
        elif F >= 2 * _LANE:
            tF = max(_LANE, ((F // 2) // _LANE) * _LANE)
    return tB, tF


def positional_encoding(x, *, encoding_type: str = "sinusoidal", donate: bool = False):
    """Apply sinusoidal/fourier positional encoding; x: (B, S, D)."""
    if encoding_type not in ("sinusoidal", "fourier"):
        raise ValueError(
            f"Positional encoding type '{encoding_type}' not recognized. "
            "Choose 'sinusoidal' or 'fourier'."
        )
    B, S, D = x.shape
    F = S * D
    itemsize = x.dtype.itemsize

    # Lane-dense layout: flatten (S, D) -> F so the output last dim is a
    # multiple of 128 (unmasked vst) regardless of d_model.
    x2 = x.reshape(B, F)
    tB, tF = _pick_tiles(B, F, itemsize)
    grid = (pl.cdiv(B, tB), pl.cdiv(F, tF))

    kernel = functools.partial(_pe_add_kernel, d_model=D, encoding_type=encoding_type)
    cost = pl.CostEstimate(
        flops=int(B * F),                                  # one add per element
        transcendentals=int(3 * F * grid[0]),              # exp+sin+cos per flat tile row
        bytes_accessed=int(2 * B * F * itemsize),          # pure HBM stream (read+write)
    )

    out2 = pl.pallas_call(
        kernel,
        out_shape=jax.ShapeDtypeStruct((B, F), x.dtype),
        grid_spec=pltpu.PrefetchScalarGridSpec(
            num_scalar_prefetch=0,
            grid=grid,
            in_specs=[pl.BlockSpec((tB, tF), lambda b, f: (b, f))],
            out_specs=pl.BlockSpec((tB, tF), lambda b, f: (b, f)),
        ),
        compiler_params=pltpu.CompilerParams(
            dimension_semantics=("parallel", "parallel"),   # shardable on v7x megacore
            vmem_limit_bytes=_VMEM_LIMIT_BYTES,
        ),
        cost_estimate=cost,
        input_output_aliases={0: 0} if donate else {},
    )(x2)
    return out2.reshape(B, S, D)


def _reference_f64(x, encoding_type):
    """Float64 NumPy reference mirroring the PyTorch forward (eval dropout)."""
    x64 = np.asarray(x, dtype=np.float64)
    B, S, D = x64.shape
    pos = np.arange(S, dtype=np.float64)[:, None]                       # (S, 1)
    div = np.exp(np.arange(0, D, 2, dtype=np.float64)
                 * (-math.log(10000.0) / D))                            # (D//2,)
    arg = pos * div if encoding_type == "sinusoidal" else pos / div     # (S, D//2)
    pe = np.zeros((S, D), np.float64)
    pe[:, 0::2] = np.sin(arg)
    pe[:, 1::2] = np.cos(arg)
    amag = np.zeros((S, D), np.float64)   # per-element |angle| for the tolerance
    amag[:, 0::2] = np.abs(arg)
    amag[:, 1::2] = np.abs(arg)
    return x64 + pe[None], amag[None]


def _check(out, x, encoding_type):
    ref, amag = _reference_f64(x, encoding_type)
    # sin/cos of an f32 angle `a` carries ~|a| * eps_f32 absolute error, so the
    # tolerance scales with |angle| (large only for high-frequency fourier
    # columns; PyTorch's f32 forward has the same inherent imprecision there).
    # Structural bugs (wrong even/odd mapping, wrong frequency) still produce
    # O(1) errors in the well-conditioned columns and are caught.
    tol = 1e-4 + 2e-5 * amag
    err = np.abs(np.asarray(out, dtype=np.float64) - ref)
    assert np.all(err <= tol), (
        f"{encoding_type} mismatch: max err {float(err.max()):.3e}")


if __name__ == "__main__":
    key = jax.random.PRNGKey(0)
    B, S, D = 2, 8, 32  # batch=2, seq=8, d_model=32
    x = jax.random.normal(key, (B, S, D), dtype=jnp.float32)

    out_s = jax.block_until_ready(
        positional_encoding(x, encoding_type="sinusoidal"))
    _check(out_s, x, "sinusoidal")

    out_f = jax.block_until_ready(
        positional_encoding(x, encoding_type="fourier"))
    _check(out_f, x, "fourier")

    print("KERNEL_OK")
</pallas_src>

<mosaic_0001>
module attributes {stable_mosaic.version = 11 : i64} {
  func.func @_pe_add_kernel(%arg0: i32, %arg1: i32, %arg2: memref<2x128xf32, #tpu.memory_space<vmem>>, %arg3: memref<2x128xf32, #tpu.memory_space<vmem>>) attributes {dimension_semantics = [#tpu.dimension_semantics<parallel>, #tpu.dimension_semantics<parallel>], iteration_bounds = array<i64: 1, 2>, scalar_prefetch = 0 : i64, scratch_operands = 0 : i64, tpu.core_type = #tpu.core_type<tc>, window_params = [{transform_indices = @transform_0, window_bounds = array<i64: 2, 128>}, {transform_indices = @transform_1, window_bounds = array<i64: 2, 128>}]} {
    %c128_i32 = arith.constant 128 : i32
    %0 = arith.muli %arg1, %c128_i32 : i32
    %1 = tpu.iota {dimensions = array<i32: 1>} : vector<1x128xi32>
    %2 = vector.broadcast %0 : i32 to vector<1x128xi32>
    %3 = arith.addi %1, %2 : vector<1x128xi32>
    %4 = arith.sitofp %3 : vector<1x128xi32> to vector<1x128xf32>
    %cst = arith.constant 3.200000e+01 : f32
    %5 = vector.broadcast %cst : f32 to vector<1x128xf32>
    %6 = arith.divf %4, %5 : vector<1x128xf32>
    %7 = math.floor %6 : vector<1x128xf32>
    %cst_0 = arith.constant 3.200000e+01 : f32
    %8 = vector.broadcast %cst_0 : f32 to vector<1x128xf32>
    %9 = arith.mulf %7, %8 : vector<1x128xf32>
    %10 = arith.subf %4, %9 : vector<1x128xf32>
    %cst_1 = arith.constant 0.000000e+00 : f32
    %11 = vector.broadcast %cst_1 : f32 to vector<1x128xf32>
    %12 = arith.cmpf olt, %10, %11 : vector<1x128xf32>
    %cst_2 = arith.constant 1.000000e+00 : f32
    %13 = vector.broadcast %cst_2 : f32 to vector<1x128xf32>
    %14 = arith.subf %7, %13 : vector<1x128xf32>
    %15 = arith.select %12, %14, %7 : vector<1x128xi1>, vector<1x128xf32>
    %cst_3 = arith.constant 0.000000e+00 : f32
    %16 = vector.broadcast %cst_3 : f32 to vector<1x128xf32>
    %17 = arith.cmpf olt, %10, %16 : vector<1x128xf32>
    %cst_4 = arith.constant 3.200000e+01 : f32
    %18 = vector.broadcast %cst_4 : f32 to vector<1x128xf32>
    %19 = arith.addf %10, %18 : vector<1x128xf32>
    %20 = arith.select %17, %19, %10 : vector<1x128xi1>, vector<1x128xf32>
    %cst_5 = arith.constant 3.200000e+01 : f32
    %21 = vector.broadcast %cst_5 : f32 to vector<1x128xf32>
    %22 = arith.cmpf oge, %20, %21 : vector<1x128xf32>
    %cst_6 = arith.constant 1.000000e+00 : f32
    %23 = vector.broadcast %cst_6 : f32 to vector<1x128xf32>
    %24 = arith.addf %15, %23 : vector<1x128xf32>
    %25 = arith.select %22, %24, %15 : vector<1x128xi1>, vector<1x128xf32>
    %cst_7 = arith.constant 3.200000e+01 : f32
    %26 = vector.broadcast %cst_7 : f32 to vector<1x128xf32>
    %27 = arith.cmpf oge, %20, %26 : vector<1x128xf32>
    %cst_8 = arith.constant 3.200000e+01 : f32
    %28 = vector.broadcast %cst_8 : f32 to vector<1x128xf32>
    %29 = arith.subf %20, %28 : vector<1x128xf32>
    %30 = arith.select %27, %29, %20 : vector<1x128xi1>, vector<1x128xf32>
    %cst_9 = arith.constant 5.000000e-01 : f32
    %31 = vector.broadcast %cst_9 : f32 to vector<1x128xf32>
    %32 = arith.mulf %30, %31 : vector<1x128xf32>
    %33 = math.floor %32 : vector<1x128xf32>
    %cst_10 = arith.constant 2.000000e+00 : f32
    %34 = vector.broadcast %cst_10 : f32 to vector<1x128xf32>
    %35 = arith.mulf %33, %34 : vector<1x128xf32>
    %36 = arith.subf %30, %35 : vector<1x128xf32>
    %cst_11 = arith.constant 5.000000e-01 : f32
    %37 = vector.broadcast %cst_11 : f32 to vector<1x128xf32>
    %38 = arith.cmpf ogt, %36, %37 : vector<1x128xf32>
    %cst_12 = arith.constant -0.287823141 : f32
    %39 = vector.broadcast %cst_12 : f32 to vector<1x128xf32>
    %40 = arith.mulf %35, %39 : vector<1x128xf32>
    %41 = math.exp %40 : vector<1x128xf32>
    %42 = arith.mulf %25, %41 : vector<1x128xf32>
    %43 = math.cos %42 : vector<1x128xf32>
    %44 = math.sin %42 : vector<1x128xf32>
    %45 = arith.select %38, %43, %44 : vector<1x128xi1>, vector<1x128xf32>
    %c0 = arith.constant 0 : index
    %c0_13 = arith.constant 0 : index
    %46 = vector.load %arg2[%c0, %c0_13] : memref<2x128xf32, #tpu.memory_space<vmem>>, vector<2x128xf32>
    %47 = vector.broadcast %45 : vector<1x128xf32> to vector<2x128xf32>
    %48 = arith.addf %46, %47 : vector<2x128xf32>
    %c0_14 = arith.constant 0 : index
    %c0_15 = arith.constant 0 : index
    %49 = vector.load %arg3[%c0_14, %c0_15] : memref<2x128xf32, #tpu.memory_space<vmem>>, vector<2x128xf32>
    tpu.vector_store %arg3[%c0_14, %c0_15], %48 {strides = array<i32>} : memref<2x128xf32, #tpu.memory_space<vmem>>, vector<2x128xf32>,
    return
  }
  func.func @transform_0(%arg0: i32, %arg1: i32) -> (i32, i32) {
    %c0_i32 = arith.constant 0 : i32
    return %arg0, %arg1 : i32, i32
  }
  func.func @transform_1(%arg0: i32, %arg1: i32) -> (i32, i32) {
    %c0_i32 = arith.constant 0 : i32
    return %arg0, %arg1 : i32, i32
  }
}

</mosaic_0001>

<bundles_post_ra>
// kernel: tpu_custom_call.1
= control target key start
LH: loop header
LB: loop body
LE: loop exit
PB: predicated region body
PF: predicated region fallthrough
CT: control target
= control target key end

     0   :  { %6 = vsyncpa [#allocation3], 0  ;;  %s899_s0 = inlined_call_operand.hbm [shape: f32[2,256], index: 0, kind: input, shape index: {}]   ;;  %s900_s1 = inlined_call_operand.hbm [shape: f32[2,256], index: 1, kind: output, shape index: {}]  }
   0x1   :  { %8 = vsyncpa [#allocation3 + $0x1], 0 }
   0x2   :  { %9 = vsyncpa [#allocation4], 0 }
   0x3   :  { %11 = vsyncpa [#allocation4 + $0x1], 0  ;;  %s719_s6 = smov 0   ;;  %s721_s7 = smov 0  }
   0x4   :  { %s723_s8 = smov 0   ;;  %s725_s9 = smov 0  }
   0x5   :  { %s727_s10 = smov 0   ;;  %s729_s11 = smov 0  }
   0x6 LB: > { %s489_s12 = sadd.s32 4294967295, %s699_s11   ;;  %s490_s13 = sadd.s32 4294967294, %s699_s11   ;;  %s699_s11 = sphi %s729_s11, %s17_s11   ;;  %s695_s10 = sphi %s727_s10, %s912_s10   ;;  %s691_s9 = sphi %s725_s9, %s911_s9   ;;  %s687_s8 = sphi %s723_s8, %s910_s8   ;;  %s683_s7 = sphi %s721_s7, %s909_s7   ;;  %s679_s6 = sphi %s719_s6, %s908_s6  }
   0x7   : > { %s26_s14 = sadd.s32 1, %s695_s10  ;;  %s38_s15 = sadd.s32 1, %s687_s8 }
   0x8   : > { %p27_p0 = scmp.ge.s32.totalorder %s26_s14, 2  ;;  %p45_p1 = scmp.ne.s32.totalorder %s687_s8, %s683_s7 }
   0x9   : > { %p46_p2 = scmp.eq.s32.totalorder %s699_s11, 0  ;;  %p51_p3 = scmp.ne.s32.totalorder %s683_s7, %s679_s6 }
   0xa   : > { %s914_s14 = smov (%p27_p0, %s26_s14), 0  ;;  %p52_p5 = scmp.eq.s32.totalorder %s489_s12, 0 }
   0xb   : > { %p760_p4 = por %p46_p2, %p45_p1  ;;  %s34_s17 = ssub.s32 %s695_s10, %s914_s14 }
   0xc   : > { %p77_p6 = scmp.eq.s32.totalorder %s489_s12, 1  ;;  %p36_p7 = scmp.eq.s32.totalorder %s34_s17, 0 }
   0xd   : > { %p766_p8 = por %p52_p5, %p51_p3  ;;  %p83_p10 = scmp.eq.s32.totalorder %s490_s13, 1 }
   0xe   : > { %p770_p9 = por %p77_p6, %p45_p1  ;;  %p529_p13 = scmp.lt.s32.totalorder %s699_s11, 2 }
   0xf   : > { %s775_s20 = scalar_select %p36_p7, %s687_s8, %s38_s15  }
  0x10   : > { %p777_p11 = por %p83_p10, %p51_p3  ;;  %s103_s22 = sand.u32 1, %s687_s8  }
  0x11   : > { %s493_s23 = sshll.u32 %s103_s22, 1  ;;  %s494_s24 = sshll.u32 %s695_s10, 5 }
  0x12   : > { %s904_s21 = scalar_select %p777_p11, 1, 0 }
  0x13   : > { %s114_s27 = scalar_lea.hbm %s899_s0, %s494_s24  ;;  %s107_s28 = scalar_lea.vmem [#allocation2], %s493_s23 }
  0x14   : > { %s116_s29 = sshll.u32 %s107_s28, 4  ;;  %p790_p0 = pnand %p529_p13, %p760_p4  ;;  %s117_s29 = int_to_ptr.vmem [resolvable:$true] %s116_s29 }
  0x15   : > { %p495_p1 = scmp.ge.s32.totalorder %s699_s11, 1  ;;  %p121_p2 = scmp.lt.s32.totalorder %s699_s11, 3 }
  0x16   : > { %s104_s2 = scalar_lea.sflag [#allocation3], %s103_s22  ;;  %p593_p3 = pneg %p790_p0 }
  0x17   : > { %s604_s3 = scalar_lea.vmem %s117_s29, 32  ;;  %s701_s4 = smov [#allocation2]  }
  0x18   : > { %p605_p5 = scmp.ne.s32.totalorder %s117_s29, %s604_s3  ;;  %s609_s5 = sshll.u32 %s701_s4, 4  ;;  %s610_s5 = int_to_ptr.vmem [resolvable:$false] %s609_s5 }
  0x19   : > { %s611_s12 = scalar_lea.vmem %s610_s5, 64  ;;  %p612_p10 = scmp.lt.s32.totalorder %s117_s29, %s610_s5 }
  0x1a   : > { %p607_p6 = pnand %p605_p5, %p593_p3  ;;  %p613_p12 = scmp.lt.s32.totalorder %s611_s12, %s604_s3 }
  0x1c   : > { %p608_p7 = pneg %p607_p6  ;;  %p614_p4 = por %p613_p12, %p612_p10 }
  0x1e   : > { %p615_p13 = pnand %p614_p4, %p608_p7 }
  0x20   : > { %618 = shalt.err (!%p615_p13)
}
  0x21   : > { %524 = dma.hbm_to_vmem [thread:$0]  (!%p790_p0), %s114_s27, 32, %s117_s29, %s104_s2  }
  0x22   : > { %p122_p11 = pnand %p495_p1, %p121_p2 }
  0x23   : > { %s805_s13 = sand.u32 (!%p122_p11), 1, %s683_s7  }
  0x24   : > { %125 = sbr.rel (%p122_p11) target bundleno = 189 (0xbd), region = 24  ;;  %s496_s15 = sshll.u32 (!%p122_p11), %s805_s13, 1 }
  0x25   : > { %s128_s16 = scalar_lea.sflag (!%p122_p11), [#allocation3], %s805_s13  ;;  %s811_s17 = scalar_lea.vmem (!%p122_p11), [#allocation2], %s496_s15 }
  0x29   : > { %670 = dma.done.wait (%p766_p8), %s128_s16, 32  }
  0x2a   : > { %672 = vsyncadd (%p766_p8), %s128_s16, 4294967264  ;;  %s498_s22 = sshll.u32 %s691_s9, 7  ;;  %v151_v0 = vlaneseq  ;;  %v702_v36 = vmov 683565275   ;;  %v703_v38 = vmov 2475754826  }
  0x2b   : > { %v153_v1 = vstv %s498_s22  ;;  %v704_v40 = vmov 2131351028   ;;  %v705_v42 = vmov 2102212464   ;;  %v706_v44 = vmov 920167782  }
  0x2c   : > { %v152_v2 = vand.u32 127, %v151_v0  ;;  %v707_v51 = vmov 1326507024   ;;  %s149_s18 = scalar_lea.vmem [#allocation5], %s496_s15  ;;  %s510_s24 = sshll.u32 %s691_s9, 5 }
  0x2d   : > { %s407_s23 = sshll.u32 %s149_s18, 4  ;;  %s405_s27 = scalar_lea.hbm %s900_s1, %s510_s24  ;;  %s854_s23 = int_to_ptr.vmem [resolvable:$true] %s407_s23 }
  0x2e   : > { %v154_v3 = vadd.s32 %v153_v1, %v152_v2  ;;  %s392_s28 = scalar_lea.sflag [#allocation4], %s805_s13  ;;  %s619_s29 = scalar_lea.vmem %s854_s23, 32 }
  0x2f   : > { %p620_p8 = scmp.ne.s32.totalorder %s854_s23, %s619_s29  ;;  %s708_s9 = smov [#allocation5]  }
  0x30   : > { %v155_v4 = vcvt.s32.f32 %v154_v3  ;;  %s623_s30 = sshll.u32 %s708_s9, 4  ;;  %s624_s30 = int_to_ptr.vmem [resolvable:$false] %s623_s30 }
  0x31   : > { %p621_p11 = pnand %p620_p8, %p770_p9  ;;  %s625_s2 = scalar_lea.vmem %s624_s30, 64 }
  0x32   : > { %v157_v5 = vmul.f32 0.03125, %v155_v4  ;;  %p626_p0 = scmp.lt.s32.totalorder %s854_s23, %s624_s30  ;;  %p627_p1 = scmp.lt.s32.totalorder %s625_s2, %s619_s29 }
  0x33   : > { %p622_p12 = pneg %p621_p11 }
  0x34   : > { %v158_v6 = vfloor.f32 %v157_v5  ;;  %p628_p2 = por %p627_p1, %p626_p0 }
  0x36   : > { %v159_v7 = vmul.f32 32.0, %v158_v6  ;;  %v499_v19 = vadd.f32 -1.0, %v158_v6  ;;  %p629_p3 = pnand %p628_p2, %p622_p12 }
  0x38   : > { %v160_v8 = vsub.f32 %v155_v4, %v159_v7 }
  0x3a   : > { %vm161_vm0 = vcmp.lt.f32.partialorder %v160_v8, 0.0  ;;  %v164_v9 = vadd.f32 32.0, %v160_v8 }
  0x3b   : > { %v163_v20 = vsel %vm161_vm0, %v499_v19, %v158_v6 }
  0x3c   : > { %v165_v10 = vsel %vm161_vm0, %v164_v9, %v160_v8  ;;  %v167_v21 = vadd.f32 1.0, %v163_v20 }
  0x3d   : > { %vm166_vm1 = vcmp.ge.f32.partialorder %v165_v10, 32.0  ;;  %v500_v11 = vadd.f32 -32.0, %v165_v10 }
  0x3e   : > { %v168_v22 = vsel %vm166_vm1, %v167_v21, %v163_v20 }
  0x3f   : > { %v818_v12 = vsel %vm166_vm1, %v500_v11, %v165_v10 }
  0x40   : > { %v171_v13 = vmul.f32 0.5, %v818_v12 }
  0x42   : > { %v172_v14 = vfloor.f32 %v171_v13 }
  0x44   : > { %v821_v15 = vmul.f32 2.0, %v172_v14 }
  0x46   : > { %v174_v16 = vsub.f32 %v818_v12, %v821_v15  ;;  %v176_v17 = vmul.f32 -0.28782314, %v821_v15 }
  0x48   : > { %v177_v18 = vmul.f32 1.442695, %v176_v17 }
  0x4a   : > { %585 = vpow2.f32 %v177_v18 }
  0x57   : > { %v586_v23 = vpop.eup %585 }
  0x58   : > { %v826_v24 = vmul.f32 %v586_v23, %v168_v22 }
  0x5a   : > { %v183_v25 = vand.u32 2139095040, %v826_v24  ;;  %v180_v27 = vand.u32 2147483647, %v826_v24  ;;  %vm182_vm9 = vcmp.lt.s32.totalorder %v826_v24, 0  ;;  %vm272_vm1 = vweird.f32 %v826_v24 }
  0x5c   : > { %v184_v26 = vshrl.u32 %v183_v25, 23  ;;  %v187_v30 = vand.u32 8388607, %v180_v27  ;;  %vm181_vm10 = vcmp.le.f32.partialorder %v180_v27, 0.7853982 }
  0x5e   : > { %v501_v28 = vadd.s32 4294967169, %v184_v26  ;;  %v188_v33 = vor.u32 8388608, %v187_v30 }
  0x60   : > { %v190_v29 = vadd.s32 1, %v501_v28  ;;  %v228_v53 = vshll.u32 %v188_v33, 8 }
  0x62   : > { %vm191_vm2 = vcmp.gt.s32.totalorder %v190_v29, 0 }
  0x63   : > { %v192_v31 = vsel %vm191_vm2, %v190_v29, 0  ;;  %vm175_vm2 = vcmp.gt.f32.partialorder %v174_v16, 0.5 }
  0x64   : > { %v194_v32 = vand.u32 31, %v192_v31  ;;  %v193_v34 = vshrl.u32 %v192_v31, 5 }
  0x66   : > { %v195_v35 = vsub.s32 32, %v194_v32  ;;  %v197_v37 = vshll.u32 %v702_v36, %v194_v32  ;;  %v200_v39 = vshll.u32 %v703_v38, %v194_v32  ;;  %v203_v41 = vshll.u32 %v704_v40, %v194_v32 }
  0x67   : > { %v206_v43 = vshll.u32 %v705_v42, %v194_v32  ;;  %v209_v45 = vshll.u32 %v706_v44, %v194_v32  ;;  %vm212_vm3 = vcmp.lt.s32.totalorder %v193_v34, 1  ;;  %vm215_vm4 = vcmp.lt.s32.totalorder %v193_v34, 4 }
  0x68   : > { %v196_v46 = vshrl.u32 %v702_v36, %v195_v35  ;;  %v198_v47 = vshrl.u32 %v703_v38, %v195_v35  ;;  %v201_v48 = vshrl.u32 %v704_v40, %v195_v35  ;;  %v204_v49 = vshrl.u32 %v705_v42, %v195_v35 }
  0x69   : > { %v207_v50 = vshrl.u32 %v706_v44, %v195_v35  ;;  %v210_v52 = vshrl.u32 %v707_v51, %v195_v35  ;;  %vm213_vm5 = vcmp.lt.s32.totalorder %v193_v34, 2  ;;  %vm214_vm6 = vcmp.lt.s32.totalorder %v193_v34, 3 }
  0x6a   : > { %v199_v54 = vor.u32 %v198_v47, %v197_v37  ;;  %v202_v55 = vor.u32 %v201_v48, %v200_v39  ;;  %v205_v56 = vor.u32 %v204_v49, %v203_v41 }
  0x6b   : > { %v208_v57 = vor.u32 %v207_v50, %v206_v43  ;;  %v211_v58 = vor.u32 %v210_v52, %v209_v45 }
  0x6c   : > { %v216_v59 = vsel %vm212_vm3, %v196_v46, %v199_v54  ;;  %v217_v60 = vsel %vm215_vm4, %v205_v56, 2102212464  ;;  %v220_v61 = vsel %vm212_vm3, %v199_v54, %v202_v55  ;;  %v224_v62 = vsel %vm212_vm3, %v202_v55, %v205_v56 }
  0x6d   : > { %v218_v63 = vsel %vm214_vm6, %v202_v55, %v217_v60  ;;  %v221_v0 = vsel %vm215_vm4, %v208_v57, 920167782  ;;  %v225_v1 = vsel %vm215_vm4, %v211_v58, 1326507024 }
  0x6e   : > { %v222_v2 = vsel %vm214_vm6, %v205_v56, %v221_v0  ;;  %v226_v3 = vsel %vm214_vm6, %v208_v57, %v225_v1  ;;  %v219_v4 = vsel %vm213_vm5, %v216_v59, %v218_v63  ;;  %v388_v59 = vld [vmem:[%s811_s17] sm:$0x3] }
  0x6f   : > { %v223_v5 = vsel %vm213_vm5, %v220_v61, %v222_v2  ;;  %v227_v6 = vsel %vm213_vm5, %v224_v62, %v226_v3  ;;  %v235_v11 = vmul.u32 %v228_v53, %v219_v4 }
  0x70   : > { %v832_v7 = vmul.u32.u64.low %v228_v53, %v227_v6  ;;  %v833_v8 = vmul.u32.u64.high %v228_v53, %v227_v6, %v832_v7  ;;  %v835_v9 = vmul.u32.u64.low %v228_v53, %v223_v5  ;;  %v836_v10 = vmul.u32.u64.high %v228_v53, %v223_v5, %v835_v9 }
  0x72   : > { %vm237_vm7 = vc.u32 %v833_v8, %v835_v9  ;;  %v238_v13 = vadd.s32 1, %v836_v10  ;;  %v236_v28 = vadd.s32 %v835_v9, %v833_v8 }
  0x74   : > { %v239_v14 = vsel %vm237_vm7, %v238_v13, %v836_v10 }
  0x75   : > { %v240_v17 = vadd.s32 %v239_v14, %v235_v11 }
  0x77   : > { %v241_v18 = vadd.s32 536870912, %v240_v17 }
  0x79   : > { %v242_v19 = vshrl.u32 %v241_v18, 30 }
  0x7b   : > { %v243_v20 = vshll.u32 %v242_v19, 30  ;;  %v266_v41 = vsub.s32 4, %v242_v19 }
  0x7d   : > { %v244_v21 = vsub.s32 %v240_v17, %v243_v20  ;;  %v267_v44 = vsel %vm182_vm9, %v266_v41, %v242_v19 }
  0x7e   : > { %v269_v46 = vsel %vm181_vm10, 0, %v267_v44 }
  0x7f   : > { %v246_v22 = vsub.s32 0, %v244_v21  ;;  %v376_v47 = vadd.s32 3, %v269_v46  ;;  %v273_v48 = vand.u32 3, %v269_v46 }
  0x81   : > { %v502_v23 = vmin.u32 %v246_v22, %v244_v21  ;;  %v377_v49 = vand.u32 3, %v376_v47  ;;  %vm278_vm11 = vcmp.eq.s32.totalorder %v273_v48, 2  ;;  %vm275_vm13 = vcmp.eq.s32.totalorder %v273_v48, 0 }
  0x82   : > { %vm274_vm15 = vcmp.lt.s32.totalorder %v273_v48, 2 }
  0x83   : > { %v248_v25 = vclz %v502_v23  ;;  %vm382_vm12 = vcmp.eq.s32.totalorder %v377_v49, 2  ;;  %vm379_vm14 = vcmp.eq.s32.totalorder %v377_v49, 0  ;;  %vm378_vm0 = vcmp.lt.s32.totalorder %v377_v49, 2 }
  0x85   : > { %v503_v26 = vadd.s32 4294967294, %v248_v25 }
  0x87   : > { %vm504_vm8 = vcmp.lt.s32.totalorder %v503_v26, 0 }
  0x88   : > { %v251_v29 = vsel %vm504_vm8, 0, %v503_v26 }
  0x89   : > { %v252_v30 = vsub.s32 32, %v251_v29  ;;  %v253_v31 = vshll.u32 %v244_v21, %v251_v29  ;;  %v256_v32 = vsub.s32 4294967266, %v251_v29 }
  0x8b   : > { %v254_v33 = vshrl.u32 %v236_v28, %v252_v30  ;;  %v257_v34 = vadd.s32 127, %v256_v32 }
  0x8d   : > { %v255_v35 = vor.u32 %v254_v33, %v253_v31  ;;  %v258_v36 = vshll.u32 %v257_v34, 23 }
  0x8f   : > { %v259_v37 = vor.u32 4788187, %v258_v36  ;;  %v262_v38 = vcvt.s32.f32 %v255_v35 }
  0x91   : > { %v260_v39 = vand.u32 2147483647, %v259_v37 }
  0x93   : > { %v263_v40 = vmul.f32 %v262_v38, %v260_v39 }
  0x95   : > { %v264_v42 = vxor.u32 2147483648, %v263_v40 }
  0x97   : > { %v265_v43 = vsel %vm182_vm9, %v264_v42, %v263_v40 }
  0x98   : > { %v268_v45 = vsel %vm181_vm10, %v826_v24, %v265_v43 }
  0x99   : > { %587 = vcosq.f32 %v268_v45 }
  0x9a   : > { %589 = vsinq.f32 %v268_v45 }
  0xa6   : > { %v588_v50 = vpop.eup %587 }
  0xa7   : > { %v590_v51 = vpop.eup %589  ;;  %v279_v52 = vxor.u32 2147483648, %v588_v50 }
  0xa8   : > { %v276_v27 = vxor.u32 2147483648, %v590_v51 }
  0xa9   : > { %v280_v53 = vsel %vm278_vm11, %v279_v52, %v590_v51  ;;  %v384_v54 = vsel %vm382_vm12, %v279_v52, %v590_v51 }
  0xaa   : > { %v277_v55 = vsel %vm275_vm13, %v588_v50, %v276_v27  ;;  %v381_v56 = vsel %vm379_vm14, %v588_v50, %v276_v27 }
  0xab   : > { %v281_v57 = vsel %vm274_vm15, %v277_v55, %v280_v53  ;;  %v385_v58 = vsel %vm378_vm0, %v381_v56, %v384_v54 }
  0xac   : > { %v282_v60 = vsel %vm272_vm1, nan, %v281_v57  ;;  %v386_v61 = vsel %vm272_vm1, nan, %v385_v58 }
  0xad   : > { %v387_v24 = vsel %vm175_vm2, %v282_v60, %v386_v61 }
  0xae   : > { %v389_v12 = vadd.f32 %v388_v59, %v387_v24 }
  0xb0   : > { %390 = vst [vmem:[%s149_s18] sm:$0x3] %v389_v12 }
  0xb1   : > { %632 = shalt.err (!%p629_p3)
}
  0xb2   : > { %s633_s3 = scalar_lea.hbm %s405_s27, 32  ;;  %s637_s12 = scalar_lea.hbm %s900_s1, 64 }
  0xb3   : > { %p634_p5 = scmp.ne.s32.totalorder %s405_s27, %s633_s3  ;;  %p638_p10 = scmp.lt.s32.totalorder %s405_s27, %s900_s1 }
  0xb4   : > { %p639_p4 = scmp.lt.s32.totalorder %s637_s12, %s633_s3 }
  0xb5   : > { %p635_p6 = pnand %p634_p5, %p770_p9 }
  0xb6   : > { %p640_p13 = por %p639_p4, %p638_p10 }
  0xb7   : > { %p636_p7 = pneg %p635_p6 }
  0xb9   : > { %p641_p8 = pnand %p640_p13, %p636_p7 }
  0xbb   : > { %644 = shalt.err (!%p641_p8)
}
  0xbc   : > { %519 = dma.vmem_to_hbm [thread:$0]  (%p770_p9), %s854_s23, 32, %s405_s27, %s392_s28  }
  0xbd PF: > { %s419_s16 = sand.u32 1, %s679_s6   ;;  %p906_p11 = scmp.ne.s32.totalorder %s904_s21, 0 }
  0xbe   : > { %p907_p12 = scmp.ge.s32.totalorder %s699_s11, 2  ;;  %s420_s17 = scalar_lea.sflag [#allocation4], %s419_s16 }
  0xc0   : > { %p526_p0 = pnand %p907_p12, %p906_p11 }
  0xc2   : > { %p527_p1 = pneg %p526_p0 }
  0xc4   : > { %674 = dma.done.wait (%p527_p1), %s420_s17, 32  }
  0xc5   : > { %676 = vsyncadd (%p527_p1), %s420_s17, 4294967264  ;;  %s17_s11 = sadd.s32 1, %s699_s11   ;;  %s908_s6 = smov %s683_s7 }
  0xc6   : > { %p14_p2 = scmp.ge.s32.totalorder %s17_s11, 4   ;;  %s909_s7 = smov %s687_s8 }
  0xc7   : > { %s910_s8 = smov %s775_s20  ;;  %s911_s9 = smov %s695_s10 }
  0xc8   : > { %s912_s10 = smov %s914_s14  ;;  %16 = sbr.rel (!%p14_p2) target bundleno = 6 (0x6), region = 69 }
  0xcd   :  { %425 = vsyncpa [#allocation3], 1 }
  0xce   :  { %427 = vsyncpa [#allocation3 + $0x1], 1 }
  0xcf   :  { %428 = vsyncpa [#allocation4], 1 }
  0xd0   :  { %430 = vsyncpa [#allocation4 + $0x1], 1 }

</bundles_post_ra>
